<compile_context>
chip_gen: v6e
topology: v6e:2x2x1
jax: 0.10.0
libtpu: 0.0.40
codegen_flags: <defaults>
</compile_context>

<pallas_src>
import functools

import jax
import jax.numpy as jnp
from jax.experimental import pallas as pl
from jax.experimental.pallas import tpu as pltpu

LN_EPS = 1e-5              # torch.nn.LayerNorm default
_MAX_TILE_ROWS_LN = 2048   # keep per-grid-step latency bounded (LN-only kernel)
_MAX_TILE_ROWS_MM = 1024   # fused LN+matmul kernel (f32 accumulator scales with rows*tn)


# ---------------------------------------------------------------------------
# helpers
# ---------------------------------------------------------------------------
def _round_up(x, m):
    return ((x + m - 1) // m) * m


def _sublane_multiple(dtype):
    # 8 rows per vreg for 32-bit, 16 for bf16, 32 for int8/fp8 (sublane packing).
    return 8 * max(1, 4 // jnp.dtype(dtype).itemsize)


def _vmem_capacity_bytes():
    try:
        return int(pltpu.get_tpu_info().vmem_capacity_bytes)
    except Exception:
        return 64 * 1024 * 1024  # conservative: v7x per-TC VMEM


def _usable_vmem_bytes():
    """Per-chip usable VMEM: leave Mosaic scratch headroom (v7x ~48 MiB, v5e/v6e ~102 MiB)."""
    cap = _vmem_capacity_bytes()
    return max(16 << 20, min(cap - (16 << 20), int(cap * 0.8)))


def _select_tile_rows(rows, per_row_bytes, fixed_bytes, in_dtype, max_tile_rows, usable):
    """Largest sublane-aligned row tile whose streamed traffic fits the VMEM budget."""
    sub = _sublane_multiple(in_dtype)
    budget = max(usable - fixed_bytes, per_row_bytes * sub)
    tile = min(budget // per_row_bytes, max_tile_rows, _round_up(rows, sub))
    tile = max(sub, (tile // sub) * sub)
    return int(tile)


def _layernorm_body(x, g, b):
    """LayerNorm over the last (logical) dim. x is f32; Mosaic handles lane padding."""
    d = x.shape[-1]
    inv_d = 1.0 / d
    mean = jnp.sum(x, axis=-1, keepdims=True) * inv_d
    centered = x - mean
    var = jnp.sum(centered * centered, axis=-1, keepdims=True) * inv_d  # biased (torch)
    inv = jax.lax.rsqrt(var + LN_EPS)
    return centered * inv * g + b


# ---------------------------------------------------------------------------
# standalone LayerNorm kernel (general path; optional fused activation epilogue)
# ---------------------------------------------------------------------------
def _layernorm_kernel(x_ref, g_ref, b_ref, o_ref, *, activation):
    x = x_ref[...].astype(jnp.float32)
    y = _layernorm_body(x, g_ref[...], b_ref[...])
    if activation == "gelu":
        y = jax.nn.gelu(y, approximate=True)
    elif activation == "relu":
        y = jnp.maximum(y, 0.0)
    o_ref[...] = y.astype(o_ref.dtype)


@functools.partial(jax.jit, static_argnames=("activation",))
def layernorm_pallas(x, gamma, beta, activation=None):
    """LayerNorm over the last dim of x (any leading dims), via Pallas."""
    orig_shape = x.shape
    d = orig_shape[-1]
    x2 = x.reshape(-1, d)
    rows = x2.shape[0]

    itm = jnp.dtype(x.dtype).itemsize
    usable = _usable_vmem_bytes()
    # Per-row VMEM: x tile (double-buffered) + out tile (double-buffered) + f32
    # intermediates (astype copy + centered) kept live while computing.
    per_row = 2 * d * itm + 2 * d * itm + 2 * d * 4
    fixed = 2 * 2 * d * 4                       # gamma + beta (f32), double-buffered
    tile_rows = _select_tile_rows(rows, per_row, fixed, x.dtype,
                                  _MAX_TILE_ROWS_LN, usable)

    g2 = gamma.astype(jnp.float32).reshape(1, d)
    b2 = beta.astype(jnp.float32).reshape(1, d)

    out = pl.pallas_call(
        functools.partial(_layernorm_kernel, activation=activation),
        out_shape=jax.ShapeDtypeStruct((rows, d), x.dtype),
        grid_spec=pltpu.PrefetchScalarGridSpec(
            num_scalar_prefetch=0,
            grid=(pl.cdiv(rows, tile_rows),),
            in_specs=[
                pl.BlockSpec((tile_rows, d), lambda i: (i, 0)),
                pl.BlockSpec((1, d), lambda i: (0, 0)),
                pl.BlockSpec((1, d), lambda i: (0, 0)),
            ],
            out_specs=pl.BlockSpec((tile_rows, d), lambda i: (i, 0)),
        ),
        compiler_params=pltpu.CompilerParams(
            dimension_semantics=("parallel",),
            vmem_limit_bytes=usable,
        ),
    )(x2, g2, b2)
    return out.reshape(orig_shape)


# ---------------------------------------------------------------------------
# fused LayerNorm + Linear kernel (fn == Linear fast path, N-tiled weight)
# ---------------------------------------------------------------------------
def _prenorm_linear_kernel(x_ref, g_ref, b_ref, w_ref, bias_ref, o_ref, y_ref):
    # Compute the normalized row tile once per row block (j == 0), reuse across N tiles.
    @pl.when(pl.program_id(1) == 0)
    def _():
        x = x_ref[...].astype(jnp.float32)
        y = _layernorm_body(x, g_ref[...], b_ref[...])
        y_ref[...] = y.astype(y_ref.dtype)

    acc = jnp.dot(y_ref[...], w_ref[...], preferred_element_type=jnp.float32)
    o_ref[...] = (acc + bias_ref[...]).astype(o_ref.dtype)


@jax.jit
def prenorm_linear_pallas(x, gamma, beta, w, bias):
    """fn(LayerNorm(x)) with fn = Linear(w, bias), fused in one Pallas kernel."""
    orig_shape = x.shape
    d = orig_shape[-1]
    n_out = w.shape[1]
    x2 = x.reshape(-1, d)
    rows = x2.shape[0]

    itm_in = jnp.dtype(x.dtype).itemsize
    itm_w = jnp.dtype(w.dtype).itemsize
    itm_out = jnp.dtype(x.dtype).itemsize
    usable = _usable_vmem_bytes()

    # N tile: full width when small (always a legal block); otherwise MXU-friendly 256
    # (128-multiple keeps stores lane-dense), shrunk if the weight block would eat VMEM.
    if n_out <= 512:
        tn = n_out
    else:
        tn = 256
        while tn > 128 and 2 * d * tn * itm_w > usable // 4:
            tn //= 2

    # Per-row VMEM: x tile (dbuf) + normalized scratch + f32 LN intermediates
    # + out tile (dbuf) + f32 matmul accumulator row.
    per_row = (2 * d * itm_in + d * itm_w + 2 * d * 4
               + 2 * tn * itm_out + tn * 4)
    fixed = 2 * d * tn * itm_w + 2 * (2 * d * 4 + tn * 4)  # weight block + params (dbuf)

    sub = _sublane_multiple(x.dtype)
    if fixed + per_row * sub > usable:
        # Graceful fallback: standalone LN kernel + plain XLA matmul (no fused path).
        y = layernorm_pallas(x, gamma, beta)
        return (y.astype(w.dtype) @ w + bias).astype(x.dtype)

    tile_rows = _select_tile_rows(rows, per_row, fixed, x.dtype,
                                  _MAX_TILE_ROWS_MM, usable)

    g2 = gamma.astype(jnp.float32).reshape(1, d)
    b2 = beta.astype(jnp.float32).reshape(1, d)
    bias2 = bias.astype(jnp.float32).reshape(1, n_out)

    out = pl.pallas_call(
        _prenorm_linear_kernel,
        out_shape=jax.ShapeDtypeStruct((rows, n_out), x.dtype),
        grid_spec=pltpu.PrefetchScalarGridSpec(
            num_scalar_prefetch=0,
            grid=(pl.cdiv(rows, tile_rows), pl.cdiv(n_out, tn)),
            in_specs=[
                pl.BlockSpec((tile_rows, d), lambda i, j: (i, 0)),
                pl.BlockSpec((1, d), lambda i, j: (0, 0)),
                pl.BlockSpec((1, d), lambda i, j: (0, 0)),
                pl.BlockSpec((d, tn), lambda i, j: (0, j)),     # weight N-tile
                pl.BlockSpec((1, tn), lambda i, j: (0, j)),
            ],
            out_specs=pl.BlockSpec((tile_rows, tn), lambda i, j: (i, j)),
            scratch_shapes=[pltpu.VMEM((tile_rows, d), w.dtype)],  # normalized rows
        ),
        compiler_params=pltpu.CompilerParams(
            # N axis must stay "arbitrary": the LN scratch written at j==0 is reused
            # across j, so only the row axis may be sharded across cores.
            dimension_semantics=("parallel", "arbitrary"),
            vmem_limit_bytes=usable,
        ),
    )(x2, g2, b2, w, bias2)
    return out.reshape(orig_shape[:-1] + (n_out,))


# ---------------------------------------------------------------------------
# module-equivalent wrappers
# ---------------------------------------------------------------------------
class Linear:
    """Minimal linear layer whose weights PreNorm can fuse into the kernel."""

    def __init__(self, weight, bias=None):
        self.weight = weight  # (D_in, D_out)
        self.bias = bias if bias is not None else jnp.zeros(
            (weight.shape[1],), weight.dtype)

    def __call__(self, x):
        return x @ self.weight + self.bias


_FUSABLE_ACTIVATIONS = {jax.nn.gelu: "gelu", jax.nn.relu: "relu"}


class PreNorm:
    """JAX/Pallas equivalent of the PyTorch PreNorm module."""

    def __init__(self, dim, fn):
        self.dim = dim
        self.fn = fn
        # nn.LayerNorm(dim) parameters; torch default is weight=1, bias=0 — use slightly
        # non-trivial deterministic values so the scale/shift path is exercised.
        self.gamma = 1.0 + 0.01 * jnp.arange(dim, dtype=jnp.float32)
        self.beta = 0.01 * jnp.arange(dim, dtype=jnp.float32)

    def __call__(self, x, *args, **kwargs):
        if isinstance(self.fn, Linear) and not args and not kwargs:
            # Fused path: LN + MXU matmul in one kernel (normalized tensor never hits HBM).
            return prenorm_linear_pallas(x, self.gamma, self.beta,
                                         self.fn.weight, self.fn.bias)
        if not args and not kwargs:
            try:
                act = _FUSABLE_ACTIVATIONS.get(self.fn)
            except TypeError:
                act = None
            if act is not None:
                # Fused LN + activation epilogue (one HBM pass instead of two).
                return layernorm_pallas(x, self.gamma, self.beta, activation=act)
        # General path: arbitrary fn applied to the Pallas LayerNorm output.
        return self.fn(layernorm_pallas(x, self.gamma, self.beta), *args, **kwargs)


if __name__ == "__main__":
    B, S, D = 2, 8, 32
    key = jax.random.PRNGKey(0)
    kx, kw, kb = jax.random.split(key, 3)
    x = jax.random.normal(kx, (B, S, D), dtype=jnp.float32)

    w_fn = jax.random.normal(kw, (D, D), dtype=jnp.float32) * 0.02
    b_fn = jax.random.normal(kb, (D,), dtype=jnp.float32) * 0.01

    # Fused path (fn is a Linear).
    prenorm_fused = PreNorm(D, Linear(w_fn, b_fn))
    out_fused = jax.block_until_ready(prenorm_fused(x))

    # General path with a fusable activation (GELU fused into the LN kernel).
    prenorm_gelu = PreNorm(D, jax.nn.gelu)
    out_gelu = jax.block_until_ready(prenorm_gelu(x))

    # General path with a truly arbitrary fn (LN kernel + plain-JAX fn).
    arb_fn = lambda t: t * jnp.tanh(t)
    prenorm_arb = PreNorm(D, arb_fn)
    out_arb = jax.block_until_ready(prenorm_arb(x))

    # Pure-JAX reference of the same forward pass.
    mean = jnp.mean(x, axis=-1, keepdims=True)
    var = jnp.mean((x - mean) ** 2, axis=-1, keepdims=True)
    ref_norm = ((x - mean) * jax.lax.rsqrt(var + LN_EPS)
                * prenorm_fused.gamma + prenorm_fused.beta)
    ref_fused = ref_norm @ w_fn + b_fn
    ref_gelu = jax.nn.gelu(ref_norm)
    ref_arb = ref_norm * jnp.tanh(ref_norm)

    assert out_fused.shape == (B, S, D)
    assert jnp.allclose(out_fused, ref_fused, atol=1e-4, rtol=1e-4)
    assert out_gelu.shape == (B, S, D)
    assert jnp.allclose(out_gelu, ref_gelu, atol=1e-4, rtol=1e-4)
    assert out_arb.shape == (B, S, D)
    assert jnp.allclose(out_arb, ref_arb, atol=1e-4, rtol=1e-4)

    print("KERNEL_OK")
</pallas_src>

<mosaic_0001>
module attributes {stable_mosaic.version = 11 : i64} {
  func.func @_prenorm_linear_kernel(%arg0: i32, %arg1: i32, %arg2: memref<16x32xf32, #tpu.memory_space<vmem>>, %arg3: memref<1x32xf32, #tpu.memory_space<vmem>>, %arg4: memref<1x32xf32, #tpu.memory_space<vmem>>, %arg5: memref<32x32xf32, #tpu.memory_space<vmem>>, %arg6: memref<1x32xf32, #tpu.memory_space<vmem>>, %arg7: memref<16x32xf32, #tpu.memory_space<vmem>>, %arg8: memref<16x32xf32, #tpu.memory_space<vmem>>) attributes {dimension_semantics = [#tpu.dimension_semantics<parallel>, #tpu.dimension_semantics<arbitrary>], iteration_bounds = array<i64: 1, 1>, scalar_prefetch = 0 : i64, scratch_operands = 1 : i64, tpu.core_type = #tpu.core_type<tc>, window_params = [{transform_indices = @transform_0, window_bounds = array<i64: 16, 32>}, {pipeline_mode = #tpu.pipeline_mode<synchronous>, transform_indices = @transform_1, window_bounds = array<i64: 1, 32>}, {pipeline_mode = #tpu.pipeline_mode<synchronous>, transform_indices = @transform_2, window_bounds = array<i64: 1, 32>}, {transform_indices = @transform_3, window_bounds = array<i64: 32, 32>}, {transform_indices = @transform_4, window_bounds = array<i64: 1, 32>}, {transform_indices = @transform_5, window_bounds = array<i64: 16, 32>}]} {
    %c0_i32 = arith.constant 0 : i32
    %0 = arith.cmpi eq, %arg1, %c0_i32 : i32
    %1 = arith.extui %0 : i1 to i32
    %c0_i32_0 = arith.constant 0 : i32
    %2 = arith.cmpi ne, %1, %c0_i32_0 : i32
    scf.if %2 {
      %c0_8 = arith.constant 0 : index
      %c0_9 = arith.constant 0 : index
      %10 = vector.load %arg2[%c0_8, %c0_9] : memref<16x32xf32, #tpu.memory_space<vmem>>, vector<16x32xf32>
      %c0_10 = arith.constant 0 : index
      %c0_11 = arith.constant 0 : index
      %11 = vector.load %arg3[%c0_10, %c0_11] : memref<1x32xf32, #tpu.memory_space<vmem>>, vector<1x32xf32>
      %c0_12 = arith.constant 0 : index
      %c0_13 = arith.constant 0 : index
      %12 = vector.load %arg4[%c0_12, %c0_13] : memref<1x32xf32, #tpu.memory_space<vmem>>, vector<1x32xf32>
      %cst_14 = arith.constant dense<0.000000e+00> : vector<16xf32>
      %13 = vector.multi_reduction <add>, %10, %cst_14 [1] : vector<16x32xf32> to vector<16xf32>
      %14 = vector.shape_cast %13 : vector<16xf32> to vector<16x1xf32>
      %cst_15 = arith.constant 3.125000e-02 : f32
      %15 = vector.broadcast %cst_15 : f32 to vector<16x1xf32>
      %16 = arith.mulf %14, %15 : vector<16x1xf32>
      %17 = vector.broadcast %16 : vector<16x1xf32> to vector<16x32xf32>
      %18 = arith.subf %10, %17 : vector<16x32xf32>
      %19 = arith.mulf %18, %18 : vector<16x32xf32>
      %cst_16 = arith.constant dense<0.000000e+00> : vector<16xf32>
      %20 = vector.multi_reduction <add>, %19, %cst_16 [1] : vector<16x32xf32> to vector<16xf32>
      %21 = vector.shape_cast %20 : vector<16xf32> to vector<16x1xf32>
      %cst_17 = arith.constant 3.125000e-02 : f32
      %22 = vector.broadcast %cst_17 : f32 to vector<16x1xf32>
      %23 = arith.mulf %21, %22 : vector<16x1xf32>
      %cst_18 = arith.constant 9.99999974E-6 : f32
      %24 = vector.broadcast %cst_18 : f32 to vector<16x1xf32>
      %25 = arith.addf %23, %24 : vector<16x1xf32>
      %26 = math.rsqrt %25 : vector<16x1xf32>
      %27 = vector.broadcast %26 : vector<16x1xf32> to vector<16x32xf32>
      %28 = arith.mulf %18, %27 : vector<16x32xf32>
      %29 = vector.broadcast %11 : vector<1x32xf32> to vector<16x32xf32>
      %30 = arith.mulf %28, %29 : vector<16x32xf32>
      %31 = vector.broadcast %12 : vector<1x32xf32> to vector<16x32xf32>
      %32 = arith.addf %30, %31 : vector<16x32xf32>
      %c0_19 = arith.constant 0 : index
      %c0_20 = arith.constant 0 : index
      %33 = vector.load %arg8[%c0_19, %c0_20] : memref<16x32xf32, #tpu.memory_space<vmem>>, vector<16x32xf32>
      tpu.vector_store %arg8[%c0_19, %c0_20], %32 {strides = array<i32>} : memref<16x32xf32, #tpu.memory_space<vmem>>, vector<16x32xf32>,
    } else {
    }
    %c0 = arith.constant 0 : index
    %c0_1 = arith.constant 0 : index
    %3 = vector.load %arg8[%c0, %c0_1] : memref<16x32xf32, #tpu.memory_space<vmem>>, vector<16x32xf32>
    %c0_2 = arith.constant 0 : index
    %c0_3 = arith.constant 0 : index
    %4 = vector.load %arg5[%c0_2, %c0_3] : memref<32x32xf32, #tpu.memory_space<vmem>>, vector<32x32xf32>
    %cst = arith.constant dense<0.000000e+00> : vector<16x32xf32>
    %5 = tpu.matmul %3, %4, %cst {dimension_numbers = #tpu.dot_dimension_numbers<[1], [0], [0], [1], [0, 0, 1, 1], [], []>} : vector<16x32xf32>, vector<32x32xf32>, vector<16x32xf32> -> vector<16x32xf32>
    %c0_4 = arith.constant 0 : index
    %c0_5 = arith.constant 0 : index
    %6 = vector.load %arg6[%c0_4, %c0_5] : memref<1x32xf32, #tpu.memory_space<vmem>>, vector<1x32xf32>
    %7 = vector.broadcast %6 : vector<1x32xf32> to vector<16x32xf32>
    %8 = arith.addf %5, %7 : vector<16x32xf32>
    %c0_6 = arith.constant 0 : index
    %c0_7 = arith.constant 0 : index
    %9 = vector.load %arg7[%c0_6, %c0_7] : memref<16x32xf32, #tpu.memory_space<vmem>>, vector<16x32xf32>
    tpu.vector_store %arg7[%c0_6, %c0_7], %8 {strides = array<i32>} : memref<16x32xf32, #tpu.memory_space<vmem>>, vector<16x32xf32>,
    return
  }
  func.func @transform_0(%arg0: i32, %arg1: i32) -> (i32, i32) {
    %c0_i32 = arith.constant 0 : i32
    %c0_i32_0 = arith.constant 0 : i32
    return %arg0, %c0_i32 : i32, i32
  }
  func.func @transform_1(%arg0: i32, %arg1: i32) -> (i32, i32) {
    %c0_i32 = arith.constant 0 : i32
    %c0_i32_0 = arith.constant 0 : i32
    %c0_i32_1 = arith.constant 0 : i32
    return %c0_i32, %c0_i32_0 : i32, i32
  }
  func.func @transform_2(%arg0: i32, %arg1: i32) -> (i32, i32) {
    %c0_i32 = arith.constant 0 : i32
    %c0_i32_0 = arith.constant 0 : i32
    %c0_i32_1 = arith.constant 0 : i32
    return %c0_i32, %c0_i32_0 : i32, i32
  }
  func.func @transform_3(%arg0: i32, %arg1: i32) -> (i32, i32) {
    %c0_i32 = arith.constant 0 : i32
    %c0_i32_0 = arith.constant 0 : i32
    return %c0_i32, %arg1 : i32, i32
  }
  func.func @transform_4(%arg0: i32, %arg1: i32) -> (i32, i32) {
    %c0_i32 = arith.constant 0 : i32
    %c0_i32_0 = arith.constant 0 : i32
    return %c0_i32, %arg1 : i32, i32
  }
  func.func @transform_5(%arg0: i32, %arg1: i32) -> (i32, i32) {
    %c0_i32 = arith.constant 0 : i32
    return %arg0, %arg1 : i32, i32
  }
}

</mosaic_0001>

<bundles_post_ra>
// kernel: prenorm_linear_pallas.1
= control target key start
LH: loop header
LB: loop body
LE: loop exit
PB: predicated region body
PF: predicated region fallthrough
CT: control target
= control target key end

     0   :  { %10 = vsyncpa [#allocation4], 0  ;;  %s386_s0 = inlined_call_operand.hbm [shape: f32[16,32], index: 0, kind: input, shape index: {}]   ;;  %s387_s1 = inlined_call_operand.vmem [shape: f32[1,32], index: 1, kind: input, shape index: {}]   ;;  %s388_s2 = inlined_call_operand.vmem [shape: f32[1,32], index: 2, kind: input, shape index: {}]   ;;  %s389_s3 = inlined_call_operand.hbm [shape: f32[32,32], index: 3, kind: input, shape index: {}]   ;;  %s390_s4 = inlined_call_operand.vmem [shape: f32[1,32], index: 4, kind: input, shape index: {}]   ;;  %s391_s5 = inlined_call_operand.hbm [shape: f32[16,32], index: 5, kind: output, shape index: {}]  }
   0x1   :  { %11 = vsyncpa [#allocation7], 0 }
   0x2   :  { %12 = vsyncpa [#allocation5], 0  ;;  %s314_s18 = smov [#allocation3]  }
   0x3   :  { %s18_s19 = sshll.u32 %s314_s18, 4  ;;  %s19_s19 = int_to_ptr.vmem [resolvable:$true] %s18_s19 }
   0x4   :  { %s256_s20 = scalar_lea.vmem %s19_s19, 256  ;;  %p261_p1 = scmp.lt.s32.totalorder %s19_s19, %s19_s19 }
   0x5   :  { %p257_p0 = scmp.ne.s32.totalorder %s19_s19, %s256_s20  ;;  %p262_p2 = scmp.lt.s32.totalorder %s256_s20, %s256_s20 }
   0x7   :  { %p263_p3 = por %p262_p2, %p261_p1 }
   0x9   :  { %p264_p4 = pnand %p263_p3, %p257_p0 }
   0xb   :  { %267 = shalt.err (!%p264_p4)
}
   0xc   :  { %s315_s21 = smov 128   ;;  %s316_s22 = smov 8  }
   0xd   :  { %24 = dma.hbm_to_vmem [thread:$0]  %s386_s0, 256, %s19_s19, [#allocation4], %s315_s21, %s315_s21, %s316_s22  }
   0xe   :  { %s317_s25 = smov [#allocation6]  }
   0xf   :  { %s34_s26 = sshll.u32 %s317_s25, 4  ;;  %s35_s26 = int_to_ptr.vmem [resolvable:$true] %s34_s26 }
  0x10   :  { %s276_s27 = scalar_lea.vmem %s35_s26, 512  ;;  %p281_p6 = scmp.lt.s32.totalorder %s35_s26, %s35_s26 }
  0x11   :  { %p277_p5 = scmp.ne.s32.totalorder %s35_s26, %s276_s27  ;;  %p282_p7 = scmp.lt.s32.totalorder %s276_s27, %s276_s27 }
  0x13   :  { %p283_p8 = por %p282_p7, %p281_p6 }
  0x15   :  { %p284_p9 = pnand %p283_p8, %p277_p5 }
  0x17   :  { %287 = shalt.err (!%p284_p9)
}
  0x18   :  { %40 = dma.hbm_to_vmem [thread:$0]  %s389_s3, 512, %s35_s26, [#allocation7], %s315_s21, %s315_s21, %s316_s22  }
  0x19   :  { %308 = dma.done.wait [#allocation4], 256  }
  0x1a   :  { %309 = vsyncadd [#allocation4], 4294967040 }
  0x1b   :  { %310 = dma.done.wait [#allocation7], 512  }
  0x1c   :  { %311 = vsyncadd [#allocation7], 4294966784  ;;  %vm57_vm0 = vcmask 261120   ;;  %v53_v0 = vld [vmem:[#allocation3] sm:$0xff]  ;;  %v54_v1 = vld [vmem:[#allocation3 + $0x8] sm:$0xff] }
  0x1d   :  { %v58_v2 = vsel %vm57_vm0, %v53_v0, 0.0  ;;  %v61_v3 = vsel %vm57_vm0, %v54_v1, 0.0  ;;  %v107_v14 = vld [vmem:[#allocation6 + $0x18] sm:$0xff]  ;;  %v106_v15 = vld [vmem:[#allocation6 + $0x10] sm:$0xff]  ;;  %v105_v16 = vld [vmem:[#allocation6 + $0x8] sm:$0xff] }
  0x1e   :  { %59 = vadd.xlane.f32.xlu0 %v58_v2  ;;  %228 = vmatprep.subr.mxu0 %v107_v14  ;;  %v104_v17 = vld [vmem:[#allocation6] sm:$0xff] }
  0x1f   :  { %229 = vmatpush3.msra.mxu0 %v107_v14  ;;  %v217_v25 = vld [vmem:[%s387_s1] ss:$0 sm:$0xff] }
  0x20   :  { %230 = vmatprep.subr.mxu0 %v106_v15  ;;  %v218_v27 = vld [vmem:[%s388_s2] ss:$0 sm:$0xff]  ;;  %s318_s2 = smov [#allocation8]  }
  0x21   :  { %231 = vmatpush3.msra.mxu0 %v106_v15  ;;  %v219_v36 = vld [vmem:[%s390_s4] ss:$0 sm:$0xff]  ;;  %s204_s8 = sshll.u32 %s318_s2, 4  ;;  %s205_s8 = int_to_ptr.vmem [resolvable:$true] %s204_s8 }
  0x22   :  { %62 = vadd.xlane.f32.xlu0 %v61_v3  ;;  %232 = vmatprep.subr.mxu0 %v105_v16  ;;  %s288_s9 = scalar_lea.vmem %s205_s8, 256  ;;  %p293_p11 = scmp.lt.s32.totalorder %s205_s8, %s205_s8 }
  0x23   :  { %233 = vmatpush3.msra.mxu0 %v105_v16  ;;  %p289_p10 = scmp.ne.s32.totalorder %s205_s8, %s288_s9  ;;  %p294_p12 = scmp.lt.s32.totalorder %s288_s9, %s288_s9 }
  0x24   :  { %234 = vmatprep.subr.mxu0 %v104_v17 }
  0x25   :  { %235 = vmatpush3.msra.mxu0 %v104_v17  ;;  %p295_p13 = por %p294_p12, %p293_p11 }
  0x27   :  { %p296_p0 = pnand %p295_p13, %p289_p10 }
  0xa7   :  { %v60_v4 = vpop.xlane.xlu0 %59 }
  0xa8   :  { %v64_v5 = vmul.f32 0.03125, %v60_v4 }
  0xaa   :  { %v66_v6 = vsub.f32 %v53_v0, %v64_v5 }
  0xab   :  { %v63_v7 = vpop.xlane.xlu0 %62 }
  0xac   :  { %v65_v8 = vmul.f32 0.03125, %v63_v7  ;;  %v68_v9 = vmul.f32 %v66_v6, %v66_v6 }
  0xae   :  { %v67_v10 = vsub.f32 %v54_v1, %v65_v8  ;;  %v70_v11 = vsel %vm57_vm0, %v68_v9, 0.0 }
  0xaf   :  { %71 = vadd.xlane.f32.xlu1 %v70_v11 }
  0xb0   :  { %v69_v12 = vmul.f32 %v67_v10, %v67_v10 }
  0xb2   :  { %v73_v13 = vsel %vm57_vm0, %v69_v12, 0.0 }
  0xb3   :  { %74 = vadd.xlane.f32.xlu1 %v73_v13 }
 0x138   :  { %v72_v18 = vpop.xlane.xlu1 %71 }
 0x139   :  { %v76_v19 = vmul.f32 0.03125, %v72_v18 }
 0x13b   :  { %v78_v20 = vadd.f32 1e-05, %v76_v19 }
 0x13c   :  { %v75_v21 = vpop.xlane.xlu1 %74 }
 0x13d   :  { %244 = vrsqrt.f32 %v78_v20  ;;  %v77_v22 = vmul.f32 0.03125, %v75_v21 }
 0x13f   :  { %v79_v23 = vadd.f32 1e-05, %v77_v22 }
 0x141   :  { %246 = vrsqrt.f32 %v79_v23 }
 0x14a   :  { %v245_v24 = vpop.eup %244 }
 0x14b   :  { %v82_v26 = vmul.f32 %v245_v24, %v66_v6 }
 0x14d   :  { %v90_v28 = vmul.f32 %v217_v25, %v82_v26 }
 0x14e   :  { %v247_v29 = vpop.eup %246 }
 0x14f   :  { %v98_v30 = vadd.f32 %v218_v27, %v90_v28  ;;  %v83_v31 = vmul.f32 %v247_v29, %v67_v10 }
 0x151   :  { %100 = vst.msk [vmem:[#allocation2] sm:$0xff] %vm57_vm0, %v98_v30  ;;  %v91_v32 = vmul.f32 %v217_v25, %v83_v31 }
 0x153   :  { %v99_v33 = vadd.f32 %v218_v27, %v91_v32 }
 0x155   :  { %101 = vst.msk [vmem:[#allocation2 + $0x8] sm:$0xff] %vm57_vm0, %v99_v33 }
 0x158   :  { %v102_v34 = vld [vmem:[#allocation2] sm:$0xff] }
 0x159   :  { %236 = vmatprep.mubr.msk.f32.mxu0 %vm57_vm0, %v102_v34 }
 0x15c   :  { %v103_v35 = vld [vmem:[#allocation2 + $0x8] sm:$0xff] }
 0x15d   :  { %237 = vmatmul.mubr.msk.f32.vlgmr.msra.gmra.mxu0 %vm57_vm0, %v103_v35 }
 0x21d   :  { %v238_v37 = vpop.f32.mrf.mxu0 }
 0x21e   :  { %v194_v38 = vadd.f32 %v238_v37, %v219_v36 }
 0x21f   :  { %v188_v39 = vpop.f32.mrf.mxu0 }
 0x220   :  { %198 = vst.msk [vmem:[#allocation8 + $0x8] sm:$0xff] %vm57_vm0, %v194_v38  ;;  %v189_v40 = vadd.f32 %v219_v36, %v188_v39 }
 0x222   :  { %197 = vst.msk [vmem:[#allocation8] sm:$0xff] %vm57_vm0, %v189_v40 }
 0x223   :  { %299 = shalt.err (!%p296_p0)
}
 0x224   :  { %210 = dma.vmem_to_hbm [thread:$0]  %s205_s8, 256, %s391_s5, [#allocation5], %s315_s21, %s315_s21, %s316_s22  }
 0x225   :  { %312 = dma.done.wait [#allocation5], 256  }
 0x226   :  { %313 = vsyncadd [#allocation5], 4294967040 }
 0x227   :  { %214 = vsyncpa [#allocation4], 1 }
 0x228   :  { %215 = vsyncpa [#allocation7], 1 }
 0x229   :  { %216 = vsyncpa [#allocation5], 1 }

</bundles_post_ra>
